<compile_context>
chip_gen: v6e
topology: v6e:2x2x1
jax: 0.10.0
libtpu: 0.0.40
codegen_flags: <defaults>
</compile_context>

<pallas_src>
import functools

import jax
import jax.numpy as jnp
from jax.experimental import pallas as pl
from jax.experimental.pallas import tpu as pltpu


def _round_up(x, m):
    return (x + m - 1) // m * m


@functools.lru_cache(maxsize=1)
def _vmem_capacity_bytes():
    """One-time (cached) hardware query; never in the per-call hot path."""
    try:
        info = pltpu.get_tpu_info()
        return int(getattr(info, "vmem_capacity_bytes", 64 * 2**20))
    except Exception:
        return 64 * 2**20


# --------------------------------------------------------------------------- #
# Kernel
# --------------------------------------------------------------------------- #
def block_kernel(x_ref, wcat_ref, w2_ref, epi_ref, o_ref, *,
                 eps, out_dim, hid_p, out_p):
    """One batch tile: fused  LayerNorm( proj(x) + Linear2(ReLU(Linear1(x))) )."""
    x = x_ref[...].astype(wcat_ref.dtype)            # f32 -> bf16 in-register

    ep = epi_ref[...]                                # (8, P) f32 packed params
    b1 = ep[0:1, :hid_p]
    b_out = ep[1:2, :out_p]                          # b2 + bp, pre-folded
    gamma = ep[2:3, :out_p]
    beta = ep[3:4, :out_p]

    # Single fused MXU pass over x: columns [0, hid_p) = W1, [hid_p, :) = Wp.
    hp = jnp.dot(x, wcat_ref[...], preferred_element_type=jnp.float32)
    # MLP branch: bias -> ReLU -> (dropout = identity in eval) -> bf16 for MXU.
    # TODO(synk): training-mode dropout would need pltpu.prng_seed + prng_random_bits.
    h = jnp.maximum(hp[:, :hid_p] + b1, 0.0).astype(w2_ref.dtype)
    proj = hp[:, hid_p:]                             # residual projection branch

    y = proj + jnp.dot(h, w2_ref[...], preferred_element_type=jnp.float32) + b_out

    # LayerNorm over the TRUE out_dim (feature axis zero-padded to 128n).
    lane = jax.lax.broadcasted_iota(jnp.int32, (1, out_p), 1)
    mask = (lane < out_dim).astype(jnp.float32)
    inv_n = 1.0 / out_dim
    mean = jnp.sum(y * mask, axis=-1, keepdims=True) * inv_n
    centered = (y - mean) * mask
    var = jnp.sum(centered * centered, axis=-1, keepdims=True) * inv_n
    out = centered * jax.lax.rsqrt(var + eps) * gamma + beta

    o_ref[...] = out.astype(o_ref.dtype)


# --------------------------------------------------------------------------- #
# One-time parameter preparation (pad / cast / fuse) — NOT in the hot path.
# --------------------------------------------------------------------------- #
def prepare_block_params(params, weight_dtype=jnp.bfloat16):
    w1, b1, w2, b2, wp, bp, gamma, beta = params
    in_dim, hidden_dim = w1.shape
    out_dim = w2.shape[1]
    hid_p = _round_up(hidden_dim, 128)
    out_p = _round_up(out_dim, 128)
    P = max(hid_p, out_p)

    def pad2(a, rows, cols, dt):
        a = jnp.asarray(a, dt)
        return jnp.pad(a, ((0, rows - a.shape[0]), (0, cols - a.shape[1])))

    # Fused first-pass weight: [W1 | Wp]  (in_dim, hid_p + out_p), bf16.
    w_cat = jnp.concatenate(
        [pad2(w1, in_dim, hid_p, weight_dtype),
         pad2(wp, in_dim, out_p, weight_dtype)], axis=1)
    w2_p = pad2(w2, hid_p, out_p, weight_dtype)

    # Pack the small (1, N) epilogue params into one (8, P) f32 operand.
    b_out = (jnp.asarray(b2, jnp.float32) + jnp.asarray(bp, jnp.float32)).reshape(-1)
    epi = jnp.zeros((8, P), jnp.float32)
    epi = epi.at[0, :hidden_dim].set(jnp.asarray(b1, jnp.float32).reshape(-1))
    epi = epi.at[1, :out_dim].set(b_out)
    epi = epi.at[2, :out_dim].set(jnp.asarray(gamma, jnp.float32).reshape(-1))
    epi = epi.at[3, :out_dim].set(jnp.asarray(beta, jnp.float32).reshape(-1))

    return dict(w_cat=w_cat, w2=w2_p, epi=epi,
                in_dim=in_dim, hidden_dim=hidden_dim, out_dim=out_dim,
                hid_p=hid_p, out_p=out_p)


# --------------------------------------------------------------------------- #
# Forward wrapper (pure, jittable — no sync, no exception-driven rebuild).
# --------------------------------------------------------------------------- #
def block_forward(x, prep, *, eps=1e-5, tile_m=None, out_dtype=jnp.float32):
    """x: (B, in_dim) float32.  Returns (B, out_dim) out_dtype."""
    B, in_dim = x.shape
    assert in_dim == prep["in_dim"]
    hid_p, out_p, out_dim = prep["hid_p"], prep["out_p"], prep["out_dim"]

    # Batch tiling: multiple of 16 rows (bf16 sublane packing), up to 512 rows,
    # and >= 2 grid steps for large batches so v7x's 2nd TensorCore gets work.
    if tile_m is None:
        if B <= 256:
            tile_m = max(16, _round_up(B, 16))
        else:
            n_steps = max(2, -(-B // 512))
            tile_m = _round_up(-(-B // n_steps), 16)
    B_pad = _round_up(B, tile_m)
    grid = (B_pad // tile_m,)

    # Only the batch axis is padded; x stays f32 (cast to bf16 inside kernel).
    x_p = x.astype(jnp.float32)
    if B_pad != B:
        x_p = jnp.pad(x_p, ((0, B_pad - B), (0, 0)))

    w_cat, w2_p, epi = prep["w_cat"], prep["w2"], prep["epi"]
    P = epi.shape[1]
    cat_p = hid_p + out_p

    # Generation-aware VMEM budget.
    vmem_est = (2 * tile_m * in_dim * 4                   # x tile, double-buffered f32
                + 2 * tile_m * out_p * 4                  # out tile, double-buffered
                + 2 * (in_dim * cat_p + hid_p * out_p) * 2  # weights (bf16, 2 bufs)
                + 2 * 8 * P * 4                           # packed epilogue params
                + tile_m * (cat_p * 4 + hid_p * 2 + 3 * out_p * 4))  # temporaries
    cap = _vmem_capacity_bytes()
    hard_cap = 56 * 2**20 if cap <= 64 * 2**20 else 100 * 2**20
    vmem_limit = int(min(hard_cap, max(32 * 2**20, 2 * vmem_est)))
    # TODO(synk): for large feature dims where full weight residency no longer
    # fits (esp. v7x 64 MiB), add a feature-axis "arbitrary" grid dim with an
    # f32 accumulator scratch instead of keeping all weights resident.

    cost = pl.CostEstimate(
        flops=2 * B_pad * (in_dim * cat_p + hid_p * out_p),
        transcendentals=B_pad,                            # one rsqrt per row
        bytes_accessed=(x_p.size * 4 + w_cat.size * 2 + w2_p.size * 2
                        + epi.size * 4
                        + B_pad * out_p * jnp.dtype(out_dtype).itemsize),
    )

    out = pl.pallas_call(
        functools.partial(block_kernel, eps=eps, out_dim=out_dim,
                          hid_p=hid_p, out_p=out_p),
        out_shape=jax.ShapeDtypeStruct((B_pad, out_p), out_dtype),
        grid_spec=pltpu.PrefetchScalarGridSpec(
            num_scalar_prefetch=0,
            grid=grid,
            in_specs=[
                pl.BlockSpec((tile_m, in_dim), lambda i: (i, 0)),   # x tile
                pl.BlockSpec((in_dim, cat_p), lambda i: (0, 0)),    # [W1 | Wp]
                pl.BlockSpec((hid_p, out_p), lambda i: (0, 0)),     # W2
                pl.BlockSpec((8, P), lambda i: (0, 0)),             # packed epilogue
            ],
            out_specs=pl.BlockSpec((tile_m, out_p), lambda i: (i, 0)),
        ),
        compiler_params=pltpu.CompilerParams(
            dimension_semantics=("parallel",),
            vmem_limit_bytes=vmem_limit,
        ),
        cost_estimate=cost,
    )(x_p, w_cat, w2_p, epi)

    return out[:B, :out_dim]


# --------------------------------------------------------------------------- #
# Synthetic params + pure-JAX reference
# --------------------------------------------------------------------------- #
def init_params(key, in_dim, hidden_dim, out_dim):
    """Deterministic synthetic parameters (weights stored as (in, out))."""
    k1, k2, k3, k4, k5, k6 = jax.random.split(key, 6)
    s1 = 1.0 / jnp.sqrt(in_dim)
    s2 = 1.0 / jnp.sqrt(hidden_dim)
    w1 = jax.random.uniform(k1, (in_dim, hidden_dim), jnp.float32, -s1, s1)
    b1 = jax.random.uniform(k2, (1, hidden_dim), jnp.float32, -s1, s1)
    w2 = jax.random.uniform(k3, (hidden_dim, out_dim), jnp.float32, -s2, s2)
    b2 = jax.random.uniform(k4, (1, out_dim), jnp.float32, -s2, s2)
    wp = jax.random.uniform(k5, (in_dim, out_dim), jnp.float32, -s1, s1)
    bp = jax.random.uniform(k6, (1, out_dim), jnp.float32, -s1, s1)
    gamma = jnp.ones((1, out_dim), jnp.float32)
    beta = jnp.zeros((1, out_dim), jnp.float32)
    return (w1, b1, w2, b2, wp, bp, gamma, beta)


def block_reference(x, params, eps=1e-5, matmul_dtype=jnp.float32):
    w1, b1, w2, b2, wp, bp, gamma, beta = params

    def mm(a, w):
        return jnp.dot(a.astype(matmul_dtype), w.astype(matmul_dtype),
                       preferred_element_type=jnp.float32)

    h = jnp.maximum(mm(x, w1) + b1, 0.0)
    mlp = mm(h, w2) + b2
    proj = mm(x, wp) + bp
    y = proj + mlp
    mean = jnp.mean(y, axis=-1, keepdims=True)
    var = jnp.mean((y - mean) ** 2, axis=-1, keepdims=True)
    return (y - mean) / jnp.sqrt(var + eps) * gamma + beta


if __name__ == "__main__":
    B, in_dim, hidden_dim, out_dim = 16, 32, 64, 48   # in_dim != out_dim -> proj is Linear

    key = jax.random.PRNGKey(0)
    kx, kp = jax.random.split(key)
    x = jax.random.normal(kx, (B, in_dim), jnp.float32)
    params = init_params(kp, in_dim, hidden_dim, out_dim)

    prep = prepare_block_params(params)               # one-time pad / cast / fuse
    out = block_forward(x, prep, eps=1e-5)
    out = jax.block_until_ready(out)

    assert out.shape == (B, out_dim)
    # Tight check against a reference using the same bf16-operand / f32-accumulate dots.
    ref_bf16 = block_reference(x, params, eps=1e-5, matmul_dtype=jnp.bfloat16)
    assert jnp.allclose(out, ref_bf16, atol=2e-3, rtol=2e-3), "mismatch vs bf16-matched reference"
    # Loose sanity check against the pure-f32 reference (bf16 quantization bound).
    ref_f32 = block_reference(x, params, eps=1e-5, matmul_dtype=jnp.float32)
    assert jnp.allclose(out, ref_f32, atol=1e-1, rtol=1e-1), "mismatch vs f32 reference"

    print("KERNEL_OK")
</pallas_src>

<mosaic_0001>
module attributes {stable_mosaic.version = 11 : i64} {
  func.func @block_kernel(%arg0: i32, %arg1: memref<16x32xf32, #tpu.memory_space<vmem>>, %arg2: memref<32x256xbf16, #tpu.memory_space<vmem>>, %arg3: memref<128x128xbf16, #tpu.memory_space<vmem>>, %arg4: memref<8x128xf32, #tpu.memory_space<vmem>>, %arg5: memref<16x128xf32, #tpu.memory_space<vmem>>) attributes {dimension_semantics = [#tpu.dimension_semantics<parallel>], iteration_bounds = array<i64: 1>, scalar_prefetch = 0 : i64, scratch_operands = 0 : i64, tpu.core_type = #tpu.core_type<tc>, window_params = [{transform_indices = @transform_0, window_bounds = array<i64: 16, 32>}, {pipeline_mode = #tpu.pipeline_mode<synchronous>, transform_indices = @transform_1, window_bounds = array<i64: 32, 256>}, {pipeline_mode = #tpu.pipeline_mode<synchronous>, transform_indices = @transform_2, window_bounds = array<i64: 128, 128>}, {pipeline_mode = #tpu.pipeline_mode<synchronous>, transform_indices = @transform_3, window_bounds = array<i64: 8, 128>}, {transform_indices = @transform_4, window_bounds = array<i64: 16, 128>}]} {
    %c0 = arith.constant 0 : index
    %c0_0 = arith.constant 0 : index
    %0 = vector.load %arg1[%c0, %c0_0] : memref<16x32xf32, #tpu.memory_space<vmem>>, vector<16x32xf32>
    %1 = arith.truncf %0 : vector<16x32xf32> to vector<16x32xbf16>
    %c0_1 = arith.constant 0 : index
    %c0_2 = arith.constant 0 : index
    %2 = vector.load %arg4[%c0_1, %c0_2] : memref<8x128xf32, #tpu.memory_space<vmem>>, vector<8x128xf32>
    %3 = vector.extract_strided_slice %2 {offsets = [0, 0], sizes = [1, 128], strides = [1, 1]} : vector<8x128xf32> to vector<1x128xf32>
    %4 = vector.extract_strided_slice %2 {offsets = [1, 0], sizes = [1, 128], strides = [1, 1]} : vector<8x128xf32> to vector<1x128xf32>
    %5 = vector.extract_strided_slice %2 {offsets = [2, 0], sizes = [1, 128], strides = [1, 1]} : vector<8x128xf32> to vector<1x128xf32>
    %6 = vector.extract_strided_slice %2 {offsets = [3, 0], sizes = [1, 128], strides = [1, 1]} : vector<8x128xf32> to vector<1x128xf32>
    %c0_3 = arith.constant 0 : index
    %c0_4 = arith.constant 0 : index
    %7 = vector.load %arg2[%c0_3, %c0_4] : memref<32x256xbf16, #tpu.memory_space<vmem>>, vector<32x256xbf16>
    %cst = arith.constant dense<0.000000e+00> : vector<16x256xf32>
    %8 = tpu.matmul %1, %7, %cst {dimension_numbers = #tpu.dot_dimension_numbers<[1], [0], [0], [1], [0, 0, 1, 1], [], []>} : vector<16x32xbf16>, vector<32x256xbf16>, vector<16x256xf32> -> vector<16x256xf32>
    %9 = vector.extract_strided_slice %8 {offsets = [0, 0], sizes = [16, 128], strides = [1, 1]} : vector<16x256xf32> to vector<16x128xf32>
    %10 = vector.broadcast %3 : vector<1x128xf32> to vector<16x128xf32>
    %11 = arith.addf %9, %10 : vector<16x128xf32>
    %cst_5 = arith.constant 0.000000e+00 : f32
    %12 = vector.broadcast %cst_5 : f32 to vector<16x128xf32>
    %13 = arith.maximumf %11, %12 : vector<16x128xf32>
    %14 = arith.truncf %13 : vector<16x128xf32> to vector<16x128xbf16>
    %15 = vector.extract_strided_slice %8 {offsets = [0, 128], sizes = [16, 128], strides = [1, 1]} : vector<16x256xf32> to vector<16x128xf32>
    %c0_6 = arith.constant 0 : index
    %c0_7 = arith.constant 0 : index
    %16 = vector.load %arg3[%c0_6, %c0_7] : memref<128x128xbf16, #tpu.memory_space<vmem>>, vector<128x128xbf16>
    %cst_8 = arith.constant dense<0.000000e+00> : vector<16x128xf32>
    %17 = tpu.matmul %14, %16, %cst_8 {dimension_numbers = #tpu.dot_dimension_numbers<[1], [0], [0], [1], [0, 0, 1, 1], [], []>} : vector<16x128xbf16>, vector<128x128xbf16>, vector<16x128xf32> -> vector<16x128xf32>
    %18 = arith.addf %15, %17 : vector<16x128xf32>
    %19 = vector.broadcast %4 : vector<1x128xf32> to vector<16x128xf32>
    %20 = arith.addf %18, %19 : vector<16x128xf32>
    %21 = tpu.iota {dimensions = array<i32: 1>} : vector<1x128xi32>
    %c48_i32 = arith.constant 48 : i32
    %22 = vector.broadcast %c48_i32 : i32 to vector<1x128xi32>
    %23 = arith.cmpi slt, %21, %22 : vector<1x128xi32>
    %24 = arith.extui %23 : vector<1x128xi1> to vector<1x128xi32>
    %25 = arith.sitofp %24 : vector<1x128xi32> to vector<1x128xf32>
    %26 = vector.broadcast %25 : vector<1x128xf32> to vector<16x128xf32>
    %27 = arith.mulf %20, %26 : vector<16x128xf32>
    %cst_9 = arith.constant dense<0.000000e+00> : vector<16xf32>
    %28 = vector.multi_reduction <add>, %27, %cst_9 [1] : vector<16x128xf32> to vector<16xf32>
    %29 = vector.shape_cast %28 : vector<16xf32> to vector<16x1xf32>
    %cst_10 = arith.constant 0.020833334 : f32
    %30 = vector.broadcast %cst_10 : f32 to vector<16x1xf32>
    %31 = arith.mulf %29, %30 : vector<16x1xf32>
    %32 = vector.broadcast %31 : vector<16x1xf32> to vector<16x128xf32>
    %33 = arith.subf %20, %32 : vector<16x128xf32>
    %34 = vector.broadcast %25 : vector<1x128xf32> to vector<16x128xf32>
    %35 = arith.mulf %33, %34 : vector<16x128xf32>
    %36 = arith.mulf %35, %35 : vector<16x128xf32>
    %cst_11 = arith.constant dense<0.000000e+00> : vector<16xf32>
    %37 = vector.multi_reduction <add>, %36, %cst_11 [1] : vector<16x128xf32> to vector<16xf32>
    %38 = vector.shape_cast %37 : vector<16xf32> to vector<16x1xf32>
    %cst_12 = arith.constant 0.020833334 : f32
    %39 = vector.broadcast %cst_12 : f32 to vector<16x1xf32>
    %40 = arith.mulf %38, %39 : vector<16x1xf32>
    %cst_13 = arith.constant 9.99999974E-6 : f32
    %41 = vector.broadcast %cst_13 : f32 to vector<16x1xf32>
    %42 = arith.addf %40, %41 : vector<16x1xf32>
    %43 = math.rsqrt %42 : vector<16x1xf32>
    %44 = vector.broadcast %43 : vector<16x1xf32> to vector<16x128xf32>
    %45 = arith.mulf %35, %44 : vector<16x128xf32>
    %46 = vector.broadcast %5 : vector<1x128xf32> to vector<16x128xf32>
    %47 = arith.mulf %45, %46 : vector<16x128xf32>
    %48 = vector.broadcast %6 : vector<1x128xf32> to vector<16x128xf32>
    %49 = arith.addf %47, %48 : vector<16x128xf32>
    %c0_14 = arith.constant 0 : index
    %c0_15 = arith.constant 0 : index
    %50 = vector.load %arg5[%c0_14, %c0_15] : memref<16x128xf32, #tpu.memory_space<vmem>>, vector<16x128xf32>
    tpu.vector_store %arg5[%c0_14, %c0_15], %49 {strides = array<i32>} : memref<16x128xf32, #tpu.memory_space<vmem>>, vector<16x128xf32>,
    return
  }
  func.func @transform_0(%arg0: i32) -> (i32, i32) {
    %c0_i32 = arith.constant 0 : i32
    %c0_i32_0 = arith.constant 0 : i32
    return %arg0, %c0_i32 : i32, i32
  }
  func.func @transform_1(%arg0: i32) -> (i32, i32) {
    %c0_i32 = arith.constant 0 : i32
    %c0_i32_0 = arith.constant 0 : i32
    %c0_i32_1 = arith.constant 0 : i32
    return %c0_i32, %c0_i32_0 : i32, i32
  }
  func.func @transform_2(%arg0: i32) -> (i32, i32) {
    %c0_i32 = arith.constant 0 : i32
    %c0_i32_0 = arith.constant 0 : i32
    %c0_i32_1 = arith.constant 0 : i32
    return %c0_i32, %c0_i32_0 : i32, i32
  }
  func.func @transform_3(%arg0: i32) -> (i32, i32) {
    %c0_i32 = arith.constant 0 : i32
    %c0_i32_0 = arith.constant 0 : i32
    %c0_i32_1 = arith.constant 0 : i32
    return %c0_i32, %c0_i32_0 : i32, i32
  }
  func.func @transform_4(%arg0: i32) -> (i32, i32) {
    %c0_i32 = arith.constant 0 : i32
    %c0_i32_0 = arith.constant 0 : i32
    return %arg0, %c0_i32 : i32, i32
  }
}

</mosaic_0001>

<bundles_post_ra>
// kernel: tpu_custom_call.1
= control target key start
LH: loop header
LB: loop body
LE: loop exit
PB: predicated region body
PF: predicated region fallthrough
CT: control target
= control target key end

     0   :  { %9 = vsyncpa [#allocation3], 0  ;;  %s575_s0 = inlined_call_operand.hbm [shape: f32[16,32], index: 0, kind: input, shape index: {}]   ;;  %s576_s1 = inlined_call_operand.hbm [shape: bf16[32,256], index: 1, kind: input, shape index: {}]   ;;  %s577_s2 = inlined_call_operand.hbm [shape: bf16[128,128], index: 2, kind: input, shape index: {}]   ;;  %s578_s3 = inlined_call_operand.hbm [shape: f32[8,128], index: 3, kind: input, shape index: {}]   ;;  %s579_s4 = inlined_call_operand.hbm [shape: f32[16,128], index: 4, kind: output, shape index: {}]  }
   0x1   :  { %10 = vsyncpa [#allocation6], 0 }
   0x2   :  { %11 = vsyncpa [#allocation9], 0 }
   0x3   :  { %12 = vsyncpa [#allocation4], 0  ;;  %s514_s15 = smov [#allocation5]   ;;  %s515_s17 = smov [#allocation2]  }
   0x4   :  { %s30_s16 = sshll.u32 %s514_s15, 4  ;;  %s18_s18 = sshll.u32 %s515_s17, 4  ;;  %s31_s16 = int_to_ptr.vmem [resolvable:$true] %s30_s16  ;;  %s19_s18 = int_to_ptr.vmem [resolvable:$true] %s18_s18 }
   0x5   :  { %s414_s19 = scalar_lea.vmem %s31_s16, 512  ;;  %p419_p1 = scmp.lt.s32.totalorder %s31_s16, %s31_s16 }
   0x6   :  { %p415_p0 = scmp.ne.s32.totalorder %s31_s16, %s414_s19  ;;  %p420_p2 = scmp.lt.s32.totalorder %s414_s19, %s414_s19 }
   0x8   :  { %p421_p3 = por %p420_p2, %p419_p1 }
   0xa   :  { %p422_p4 = pnand %p421_p3, %p415_p0 }
   0xc   :  { %425 = shalt.err (!%p422_p4)
}
   0xd   :  { %s516_s20 = smov 128   ;;  %s517_s21 = smov 8  }
   0xe   :  { %36 = dma.hbm_to_vmem [thread:$0]  %s576_s1, 512, %s31_s16, [#allocation6], %s516_s20, %s516_s20, %s517_s21  }
   0xf   :  { %s434_s24 = scalar_lea.vmem %s19_s18, 256  ;;  %p439_p6 = scmp.lt.s32.totalorder %s19_s18, %s19_s18 }
  0x10   :  { %p435_p5 = scmp.ne.s32.totalorder %s19_s18, %s434_s24  ;;  %p440_p7 = scmp.lt.s32.totalorder %s434_s24, %s434_s24 }
  0x12   :  { %p441_p8 = por %p440_p7, %p439_p6 }
  0x14   :  { %p442_p9 = pnand %p441_p8, %p435_p5 }
  0x16   :  { %445 = shalt.err (!%p442_p9)
}
  0x17   :  { %24 = dma.hbm_to_vmem [thread:$0]  %s575_s0, 256, %s19_s18, [#allocation3], %s516_s20, %s516_s20, %s517_s21  }
  0x18   :  { %s518_s27 = smov [#allocation7]  }
  0x19   :  { %s42_s28 = sshll.u32 %s518_s27, 4  ;;  %s43_s28 = int_to_ptr.vmem [resolvable:$true] %s42_s28 }
  0x1a   :  { %s454_s29 = scalar_lea.vmem %s43_s28, 1024  ;;  %p459_p11 = scmp.lt.s32.totalorder %s43_s28, %s43_s28 }
  0x1b   :  { %p455_p10 = scmp.ne.s32.totalorder %s43_s28, %s454_s29  ;;  %p460_p12 = scmp.lt.s32.totalorder %s454_s29, %s454_s29 }
  0x1d   :  { %p461_p13 = por %p460_p12, %p459_p11 }
  0x1f   :  { %p462_p0 = pnand %p461_p13, %p455_p10 }
  0x21   :  { %465 = shalt.err (!%p462_p0)
}
  0x22   :  { %s519_s1 = smov 64   ;;  %s520_s30 = smov 4  }
  0x23   :  { %48 = dma.hbm_to_vmem [thread:$0]  %s577_s2, 1024, %s43_s28, [#allocation6], %s519_s1, %s519_s1, %s520_s30  }
  0x24   :  { %s521_s7 = smov [#allocation8]  }
  0x25   :  { %s55_s8 = sshll.u32 %s521_s7, 4  ;;  %s56_s8 = int_to_ptr.vmem [resolvable:$true] %s55_s8 }
  0x26   :  { %s474_s0 = scalar_lea.vmem %s56_s8, 128  ;;  %p479_p2 = scmp.lt.s32.totalorder %s56_s8, %s56_s8 }
  0x27   :  { %p475_p1 = scmp.ne.s32.totalorder %s56_s8, %s474_s0  ;;  %p480_p3 = scmp.lt.s32.totalorder %s474_s0, %s474_s0 }
  0x29   :  { %p481_p4 = por %p480_p3, %p479_p2 }
  0x2b   :  { %p482_p5 = pnand %p481_p4, %p475_p1 }
  0x2d   :  { %485 = shalt.err (!%p482_p5)
}
  0x2e   :  { %58 = dma.hbm_to_vmem [thread:$0]  %s578_s3, 128, %s56_s8, [#allocation9]  }
  0x2f   :  { %506 = dma.done.wait [#allocation3], 256  }
  0x30   :  { %507 = vsyncadd [#allocation3], 4294967040 }
  0x31   :  { %508 = dma.done.wait [#allocation6], 1536  }
  0x32   :  { %509 = vsyncadd [#allocation6], 4294965760 }
  0x33   :  { %510 = dma.done.wait [#allocation9], 128  }
  0x34   :  { %511 = vsyncadd [#allocation9], 4294967168  ;;  %v522_v0 = vmov 0   ;;  %v523_v1 = vmov 0.0   ;;  %v388_v2 = vld [vmem:[#allocation5 + $0x14] ss:$8 sps:$4 sm:$0xff]   ;;  %v147_v17 = vlaneseq }
  0x35   :  { %136 = vmatprep.mubr.bf16.mxu0 %v522_v0  ;;  %356 = vmatprep.subr.bf16.mxu1 %v523_v1  ;;  %v390_v3 = vld [vmem:[#allocation5 + $0x10] ss:$8 sps:$4 sm:$0xff]   ;;  %v391_v4 = vld [vmem:[#allocation5 + $0x4] ss:$8 sps:$4 sm:$0xff]   ;;  %v393_v5 = vld [vmem:[#allocation5] ss:$8 sps:$4 sm:$0xff]  }
  0x36   :  { %116 = vmatprep.subr.bf16.mxu0 %v388_v2  ;;  %v72_v6 = vld [vmem:[#allocation2] sm:$0xff]  ;;  %v73_v7 = vld [vmem:[#allocation2 + $0x8] sm:$0xff]  ;;  %vm100_vm0 = vcmask 261120   ;;  %v396_v11 = vld [vmem:[#allocation7 + $0x28] sm:$0xff]   ;;  %vm524_vm1 = vmmov 0   ;;  %v148_v18 = vshrl.u32 %v147_v17, 7 }
  0x37   :  { %117 = vmatpush1.bf16.msra.mxu0 %v390_v3  ;;  %v394_v8 = vld [vmem:[#allocation7 + $0x38] sm:$0xff]   ;;  %v74_v9 = vpack.c.bf16 %v73_v7, %v72_v6  ;;  %v395_v10 = vld [vmem:[#allocation7 + $0x30] sm:$0xff]   ;;  %v397_v12 = vld [vmem:[#allocation7 + $0x20] sm:$0xff]   ;;  %372 = vmatprep.mubr.msk.bf16.mxu1 %vm524_vm1, %v523_v1  ;;  %v270_v31 = vand.u32 127, %v147_v17  ;;  %s525_s2 = smov [#allocation10]  }
  0x38   :  { %118 = vmatprep.subr.bf16.mxu0 %v391_v4  ;;  %357 = vmatpush3.bf16.msra.mxu1 %v394_v8  ;;  %v398_v13 = vld [vmem:[#allocation7 + $0x18] sm:$0xff]   ;;  %v399_v14 = vld [vmem:[#allocation7 + $0x10] sm:$0xff]   ;;  %v400_v15 = vld [vmem:[#allocation7 + $0x8] sm:$0xff]   ;;  %v149_v19 = vsub.s32 0, %v148_v18  ;;  %v265_v30 = vsub.s32 1, %v148_v18  ;;  %v302_v61 = vsub.s32 2, %v148_v18 }
  0x39   :  { %358 = vmatprep.subr.bf16.mxu1 %v523_v1  ;;  %v401_v16 = vld [vmem:[#allocation7] sm:$0xff]   ;;  %vm271_vm2 = vcmp.lt.s32.totalorder %v270_v31, 48  ;;  %v308_v62 = vsub.s32 3, %v148_v18  ;;  %s319_s3 = sshll.u32 %s525_s2, 4  ;;  %s320_s3 = int_to_ptr.vmem [resolvable:$true] %s319_s3 }
  0x3a   :  { %v75_v20 = vld [vmem:[#allocation8] sm:$0xff]  ;;  %v346_v36 = vsel %vm271_vm2, 1.0, %v523_v1  ;;  %s486_s11 = scalar_lea.vmem %s320_s3, 256  ;;  %p491_p7 = scmp.lt.s32.totalorder %s320_s3, %s320_s3 }
  0x3b   :  { %119 = vmatpush1.bf16.msra.mxu0 %v393_v5  ;;  %v150_v21 = vrot.slane %v75_v20, %v149_v19  ;;  %v266_v32 = vrot.slane %v75_v20, %v265_v30  ;;  %v303_v63 = vrot.slane %v75_v20, %v302_v61  ;;  %v309_v2 = vrot.slane %v75_v20, %v308_v62  ;;  %p487_p6 = scmp.ne.s32.totalorder %s320_s3, %s486_s11  ;;  %p492_p8 = scmp.lt.s32.totalorder %s486_s11, %s486_s11 }
  0x3c   :  { %359 = vmatpush3.bf16.msra.mxu1 %v395_v10 }
  0x3d   :  { %360 = vmatprep.subr.bf16.mxu1 %v523_v1  ;;  %p493_p9 = por %p492_p8, %p491_p7 }
  0x3e   :  { %337 = vmatmul.mubr.msk.bf16.vlgmr.msra.gmra.mxu0 %vm100_vm0, %v74_v9 }
  0x3f   :  { %p494_p10 = pnand %p493_p9, %p487_p6 }
  0x40   :  { %361 = vmatpush3.bf16.msra.mxu1 %v396_v11 }
  0x41   :  { %362 = vmatprep.subr.bf16.mxu1 %v523_v1 }
  0x44   :  { %363 = vmatpush3.bf16.msra.mxu1 %v397_v12 }
  0x45   :  { %364 = vmatprep.subr.bf16.mxu1 %v523_v1 }
  0x48   :  { %365 = vmatpush3.bf16.msra.mxu1 %v398_v13 }
  0x49   :  { %366 = vmatprep.subr.bf16.mxu1 %v523_v1 }
  0x4c   :  { %367 = vmatpush3.bf16.msra.mxu1 %v399_v14 }
  0x4d   :  { %368 = vmatprep.subr.bf16.mxu1 %v523_v1 }
  0x50   :  { %369 = vmatpush3.bf16.msra.mxu1 %v400_v15 }
  0x51   :  { %370 = vmatprep.subr.bf16.mxu1 %v523_v1 }
  0x54   :  { %371 = vmatpush3.bf16.msra.mxu1 %v401_v16 }
  0xfe   :  { %v138_v22 = vpop.f32.mrf.mxu0 }
  0xff   :  { %v151_v24 = vadd.f32 %v150_v21, %v138_v22 }
 0x100   :  { %v140_v23 = vpop.f32.mrf.mxu0 }
 0x101   :  { %v153_v27 = vmax.f32 %v151_v24, 0.0 }
 0x102   :  { %v142_v25 = vpop.f32.mrf.mxu0 }
 0x103   :  { %v152_v26 = vadd.f32 %v150_v21, %v142_v25 }
 0x104   :  { %v144_v38 = vpop.f32.mrf.mxu0 }
 0x105   :  { %v154_v28 = vmax.f32 %v152_v26, 0.0 }
 0x107   :  { %v155_v29 = vpack.c.bf16 %v154_v28, %v153_v27 }
 0x109   :  { %373 = vmatmul.mubr.bf16.vlgmr.msra.gmra.mxu1 %v155_v29 }
 0x1c9   :  { %v254_v33 = vpop.f32.mrf.mxu1 }
 0x1ca   :  { %v261_v34 = vadd.f32 %v254_v33, %v140_v23 }
 0x1cb   :  { %v374_v35 = vpop.f32.mrf.mxu1 }
 0x1cc   :  { %v267_v37 = vadd.f32 %v266_v32, %v261_v34 }
 0x1cd   :  { %v257_v39 = vpop.f32.mrf.mxu1 }
 0x1ce   :  { %v262_v40 = vadd.f32 %v257_v39, %v144_v38  ;;  %v274_v41 = vmul.f32 %v346_v36, %v267_v37 }
 0x1cf   :  { %v375_v42 = vpop.f32.mrf.mxu1 }
 0x1d0   :  { %v268_v43 = vadd.f32 %v266_v32, %v262_v40  ;;  %276 = vadd.xlane.f32.xlu0 %v274_v41 }
 0x1d2   :  { %v275_v44 = vmul.f32 %v346_v36, %v268_v43 }
 0x1d4   :  { %278 = vadd.xlane.f32.xlu0 %v275_v44 }
 0x259   :  { %v277_v45 = vpop.xlane.xlu0 %276 }
 0x25a   :  { %v280_v46 = vmul.f32 0.020833334, %v277_v45 }
 0x25c   :  { %v282_v47 = vsub.f32 %v267_v37, %v280_v46 }
 0x25d   :  { %v279_v48 = vpop.xlane.xlu0 %278 }
 0x25e   :  { %v281_v49 = vmul.f32 0.020833334, %v279_v48  ;;  %v284_v50 = vmul.f32 %v346_v36, %v282_v47 }
 0x260   :  { %v283_v51 = vsub.f32 %v268_v43, %v281_v49  ;;  %v286_v52 = vmul.f32 %v284_v50, %v284_v50 }
 0x262   :  { %288 = vadd.xlane.f32.xlu1 %v286_v52  ;;  %v285_v53 = vmul.f32 %v346_v36, %v283_v51 }
 0x264   :  { %v287_v54 = vmul.f32 %v285_v53, %v285_v53 }
 0x266   :  { %290 = vadd.xlane.f32.xlu1 %v287_v54 }
 0x2eb   :  { %v289_v55 = vpop.xlane.xlu1 %288 }
 0x2ec   :  { %v292_v56 = vmul.f32 0.020833334, %v289_v55 }
 0x2ee   :  { %v294_v57 = vadd.f32 1e-05, %v292_v56 }
 0x2ef   :  { %v291_v58 = vpop.xlane.xlu1 %290 }
 0x2f0   :  { %402 = vrsqrt.f32 %v294_v57  ;;  %v293_v59 = vmul.f32 0.020833334, %v291_v58 }
 0x2f2   :  { %v295_v60 = vadd.f32 1e-05, %v293_v59 }
 0x2f4   :  { %404 = vrsqrt.f32 %v295_v60 }
 0x2fd   :  { %v403_v0 = vpop.eup %402 }
 0x2fe   :  { %v298_v1 = vmul.f32 %v403_v0, %v284_v50 }
 0x300   :  { %v304_v3 = vmul.f32 %v303_v63, %v298_v1 }
 0x301   :  { %v405_v4 = vpop.eup %404 }
 0x302   :  { %v299_v5 = vmul.f32 %v405_v4, %v285_v53  ;;  %v310_v6 = vadd.f32 %v309_v2, %v304_v3 }
 0x304   :  { %v305_v7 = vmul.f32 %v303_v63, %v299_v5  ;;  %312 = vst [vmem:[#allocation10] sm:$0xff] %v310_v6 }
 0x306   :  { %v311_v8 = vadd.f32 %v309_v2, %v305_v7 }
 0x308   :  { %313 = vst [vmem:[#allocation10 + $0x8] sm:$0xff] %v311_v8 }
 0x309   :  { %497 = shalt.err (!%p494_p10)
}
 0x30a   :  { %325 = dma.vmem_to_hbm [thread:$0]  %s320_s3, 256, %s579_s4, [#allocation4], %s516_s20, %s516_s20, %s517_s21  }
 0x30b   :  { %512 = dma.done.wait [#allocation4], 256  }
 0x30c   :  { %513 = vsyncadd [#allocation4], 4294967040 }
 0x30d   :  { %329 = vsyncpa [#allocation3], 1 }
 0x30e   :  { %330 = vsyncpa [#allocation6], 1 }
 0x30f   :  { %331 = vsyncpa [#allocation9], 1 }
 0x310   :  { %332 = vsyncpa [#allocation4], 1 }

</bundles_post_ra>
